<compile_context>
chip_gen: v7x
topology: tpu7x:2x2x1
jax: 0.10.0
libtpu: 0.0.40
codegen_flags: <defaults>
</compile_context>

<pallas_src>
import jax
import jax.numpy as jnp
import numpy as np
from jax import lax
from jax.experimental import pallas as pl
from jax.experimental.pallas import tpu as pltpu


def fancy_mlp_kernel(x_ref, wt_ref, b_ref, rw_ref, out_ref, res_ref):
    x = x_ref[...]        # (N, 20) f32
    wt = wt_ref[...]      # (20, 20) == linear.weight.T (pre-transposed in wrapper)
    b = b_ref[...]        # (1, 20)  == linear.bias
    rw = rw_ref[...]      # (20, 20) == rand_weight

    # x = self.linear(x)
    h = jnp.dot(x, wt, preferred_element_type=jnp.float32) + b
    # x = relu(x @ rand_weight + 1)
    h = jnp.maximum(jnp.dot(h, rw, preferred_element_type=jnp.float32) + 1.0, 0.0)
    # x = self.linear(x)   (same shared layer, same weights)
    h = jnp.dot(h, wt, preferred_element_type=jnp.float32) + b

    # Single pass over h: sum (final result) and sum-of-squares (Frobenius norm).
    s = jnp.sum(h).reshape(1, 1)            # (1, 1)
    ssq = jnp.sum(h * h).reshape(1, 1)      # (1, 1)
    norm0 = jnp.sqrt(ssq)                   # (1, 1)

    # while x.norm() > 1: x /= 2
    # Closed-form halving count k = smallest k >= 0 with norm0 * 2**-k <= 1, taken from
    # the fp32 exponent bits (bit-identical to the loop since /2 is exact in fp32).
    bits = pltpu.bitcast(norm0, jnp.int32)          # sign bit is 0 (norm0 >= 0)
    e = ((bits >> 23) & 0xFF) - 127                 # unbiased exponent
    mant = bits & 0x7FFFFF
    k = jnp.where(norm0 > 1.0, e + jnp.where(mant != 0, 1, 0), 0)   # (1, 1) int32

    # scale = 2**-k exactly; k <= 128 for finite fp32 norms, so build it as two
    # normal-range power-of-two factors via exponent-bit construction.
    k1 = jnp.minimum(k, 64)
    k2 = k - k1
    scale = (pltpu.bitcast((127 - k1) << 23, jnp.float32) *
             pltpu.bitcast((127 - k2) << 23, jnp.float32))          # (1, 1) f32

    # if x.norm() < 0.8: x *= 10   (norm after halvings; power-of-two scaling is exact)
    norm_f = norm0 * scale
    factor = jnp.where(norm_f < jnp.float32(0.8), jnp.float32(10.0), jnp.float32(1.0))

    # return x.sum()  ==  sum(h) * scale * factor   (scalar multiplies, no tensor pass)
    res_ref[...] = s * scale * factor               # (1,1) staging in VMEM (vector store)
    out_ref[0, 0] = res_ref[0, 0]                   # scalar result -> SMEM output


def prepare_params(linear_w, linear_b, rand_weight):
    """One-time parameter prep: (out,in) -> (in,out) transpose, bias -> (1,F), fp32 casts."""
    wt = jnp.asarray(linear_w, jnp.float32).T
    b = jnp.asarray(linear_b, jnp.float32).reshape(1, -1)
    rw = jnp.asarray(rand_weight, jnp.float32)
    return wt, b, rw


@jax.jit
def fancy_mlp(x, wt, b, rw):
    """x: (N, 20) f32; wt: (20, 20) pre-transposed weight; b: (1, 20); rw: (20, 20)."""
    out = pl.pallas_call(
        fancy_mlp_kernel,
        out_shape=jax.ShapeDtypeStruct((1, 1), jnp.float32),
        in_specs=[pl.BlockSpec(memory_space=pltpu.MemorySpace.VMEM)] * 4,
        out_specs=pl.BlockSpec(memory_space=pltpu.MemorySpace.SMEM),
        scratch_shapes=[pltpu.VMEM((1, 1), jnp.float32)],
    )(x.astype(jnp.float32), wt, b, rw)
    return out[0, 0]


def fancy_mlp_reference(x, linear_w, linear_b, rand_weight):
    """Pure-JAX reference mirroring the PyTorch forward exactly."""
    h = x @ linear_w.T + linear_b
    h = jnp.maximum(h @ rand_weight + 1.0, 0.0)
    h = h @ linear_w.T + linear_b
    h = lax.while_loop(lambda v: jnp.sqrt(jnp.sum(v * v)) > 1.0, lambda v: v / 2.0, h)
    n = jnp.sqrt(jnp.sum(h * h))
    h = jnp.where(n < 0.8, h * 10.0, h)
    return jnp.sum(h)


if __name__ == "__main__":
    key = jax.random.PRNGKey(0)
    k_x, k_rw, k_w, k_b = jax.random.split(key, 4)

    N, F = 2, 20  # batch=2, features=20 (fixed by the module: Linear(20, 20))
    x = jax.random.normal(k_x, (N, F), dtype=jnp.float32)

    # rand_weight = torch.rand((20, 20))  -> uniform [0, 1)
    rand_weight = jax.random.uniform(k_rw, (F, F), dtype=jnp.float32)

    # nn.Linear(20, 20) default init: U(-1/sqrt(in), 1/sqrt(in)) for weight and bias
    bound = 1.0 / np.sqrt(F)
    linear_w = jax.random.uniform(k_w, (F, F), minval=-bound, maxval=bound, dtype=jnp.float32)
    linear_b = jax.random.uniform(k_b, (F,), minval=-bound, maxval=bound, dtype=jnp.float32)

    wt, b, rw = prepare_params(linear_w, linear_b, rand_weight)

    out = jax.block_until_ready(fancy_mlp(x, wt, b, rw))
    ref = jax.block_until_ready(fancy_mlp_reference(x, linear_w, linear_b, rand_weight))
    np.testing.assert_allclose(np.asarray(out), np.asarray(ref), rtol=1e-3, atol=1e-5)

    print("KERNEL_OK")
</pallas_src>

<mosaic_0001>
module attributes {stable_mosaic.version = 11 : i64} {
  func.func @fancy_mlp_kernel(%arg0: memref<2x20xf32, #tpu.memory_space<vmem>>, %arg1: memref<20x20xf32, #tpu.memory_space<vmem>>, %arg2: memref<1x20xf32, #tpu.memory_space<vmem>>, %arg3: memref<20x20xf32, #tpu.memory_space<vmem>>, %arg4: memref<1x1xf32, #tpu.memory_space<smem>>, %arg5: memref<1x1xf32, #tpu.memory_space<vmem>>) attributes {dimension_semantics = [], scalar_prefetch = 0 : i64, scratch_operands = 1 : i64, tpu.core_type = #tpu.core_type<tc>} {
    %c0 = arith.constant 0 : index
    %c0_0 = arith.constant 0 : index
    %0 = vector.load %arg0[%c0, %c0_0] : memref<2x20xf32, #tpu.memory_space<vmem>>, vector<2x20xf32>
    %c0_1 = arith.constant 0 : index
    %c0_2 = arith.constant 0 : index
    %1 = vector.load %arg1[%c0_1, %c0_2] : memref<20x20xf32, #tpu.memory_space<vmem>>, vector<20x20xf32>
    %c0_3 = arith.constant 0 : index
    %c0_4 = arith.constant 0 : index
    %2 = vector.load %arg2[%c0_3, %c0_4] : memref<1x20xf32, #tpu.memory_space<vmem>>, vector<1x20xf32>
    %c0_5 = arith.constant 0 : index
    %c0_6 = arith.constant 0 : index
    %3 = vector.load %arg3[%c0_5, %c0_6] : memref<20x20xf32, #tpu.memory_space<vmem>>, vector<20x20xf32>
    %cst = arith.constant dense<0.000000e+00> : vector<2x20xf32>
    %4 = tpu.matmul %0, %1, %cst {dimension_numbers = #tpu.dot_dimension_numbers<[1], [0], [0], [1], [0, 0, 1, 1], [], []>} : vector<2x20xf32>, vector<20x20xf32>, vector<2x20xf32> -> vector<2x20xf32>
    %5 = vector.broadcast %2 : vector<1x20xf32> to vector<2x20xf32>
    %6 = arith.addf %4, %5 : vector<2x20xf32>
    %cst_7 = arith.constant dense<0.000000e+00> : vector<2x20xf32>
    %7 = tpu.matmul %6, %3, %cst_7 {dimension_numbers = #tpu.dot_dimension_numbers<[1], [0], [0], [1], [0, 0, 1, 1], [], []>} : vector<2x20xf32>, vector<20x20xf32>, vector<2x20xf32> -> vector<2x20xf32>
    %cst_8 = arith.constant 1.000000e+00 : f32
    %8 = vector.broadcast %cst_8 : f32 to vector<2x20xf32>
    %9 = arith.addf %7, %8 : vector<2x20xf32>
    %cst_9 = arith.constant 0.000000e+00 : f32
    %10 = vector.broadcast %cst_9 : f32 to vector<2x20xf32>
    %11 = arith.maximumf %9, %10 : vector<2x20xf32>
    %cst_10 = arith.constant dense<0.000000e+00> : vector<2x20xf32>
    %12 = tpu.matmul %11, %1, %cst_10 {dimension_numbers = #tpu.dot_dimension_numbers<[1], [0], [0], [1], [0, 0, 1, 1], [], []>} : vector<2x20xf32>, vector<20x20xf32>, vector<2x20xf32> -> vector<2x20xf32>
    %13 = vector.broadcast %2 : vector<1x20xf32> to vector<2x20xf32>
    %14 = arith.addf %12, %13 : vector<2x20xf32>
    %15 = vector.shape_cast %14 : vector<2x20xf32> to vector<1x2x20xf32>
    %cst_11 = arith.constant dense<0.000000e+00> : vector<1xf32>
    %16 = vector.multi_reduction <add>, %15, %cst_11 [1, 2] : vector<1x2x20xf32> to vector<1xf32>
    %17 = vector.shape_cast %16 : vector<1xf32> to vector<1x1x1xf32>
    %18 = vector.extract %17[0, 0, 0] : f32 from vector<1x1x1xf32>
    %19 = vector.broadcast %18 : f32 to vector<1x1xf32>
    %20 = arith.mulf %14, %14 : vector<2x20xf32>
    %21 = vector.shape_cast %20 : vector<2x20xf32> to vector<1x2x20xf32>
    %cst_12 = arith.constant dense<0.000000e+00> : vector<1xf32>
    %22 = vector.multi_reduction <add>, %21, %cst_12 [1, 2] : vector<1x2x20xf32> to vector<1xf32>
    %23 = vector.shape_cast %22 : vector<1xf32> to vector<1x1x1xf32>
    %24 = vector.extract %23[0, 0, 0] : f32 from vector<1x1x1xf32>
    %25 = vector.broadcast %24 : f32 to vector<1x1xf32>
    %26 = math.sqrt %25 : vector<1x1xf32>
    %27 = tpu.bitcast %26 : vector<1x1xf32> -> vector<1x1xi32>
    %c23_i32 = arith.constant 23 : i32
    %28 = vector.broadcast %c23_i32 : i32 to vector<1x1xi32>
    %29 = arith.shrsi %27, %28 : vector<1x1xi32>
    %c255_i32 = arith.constant 255 : i32
    %30 = vector.broadcast %c255_i32 : i32 to vector<1x1xi32>
    %31 = arith.andi %29, %30 : vector<1x1xi32>
    %c127_i32 = arith.constant 127 : i32
    %32 = vector.broadcast %c127_i32 : i32 to vector<1x1xi32>
    %33 = arith.subi %31, %32 : vector<1x1xi32>
    %c8388607_i32 = arith.constant 8388607 : i32
    %34 = vector.broadcast %c8388607_i32 : i32 to vector<1x1xi32>
    %35 = arith.andi %27, %34 : vector<1x1xi32>
    %cst_13 = arith.constant 1.000000e+00 : f32
    %36 = vector.broadcast %cst_13 : f32 to vector<1x1xf32>
    %37 = arith.cmpf ogt, %26, %36 : vector<1x1xf32>
    %c0_i32 = arith.constant 0 : i32
    %38 = vector.broadcast %c0_i32 : i32 to vector<1x1xi32>
    %39 = arith.cmpi ne, %35, %38 : vector<1x1xi32>
    %c1_i32 = arith.constant 1 : i32
    %c0_i32_14 = arith.constant 0 : i32
    %40 = vector.broadcast %c1_i32 : i32 to vector<1x1xi32>
    %41 = vector.broadcast %c0_i32_14 : i32 to vector<1x1xi32>
    %42 = arith.select %39, %40, %41 : vector<1x1xi1>, vector<1x1xi32>
    %43 = arith.addi %33, %42 : vector<1x1xi32>
    %c0_i32_15 = arith.constant 0 : i32
    %44 = vector.broadcast %c0_i32_15 : i32 to vector<1x1xi32>
    %45 = arith.select %37, %43, %44 : vector<1x1xi1>, vector<1x1xi32>
    %c64_i32 = arith.constant 64 : i32
    %46 = vector.broadcast %c64_i32 : i32 to vector<1x1xi32>
    %47 = arith.minsi %45, %46 : vector<1x1xi32>
    %48 = arith.subi %45, %47 : vector<1x1xi32>
    %c127_i32_16 = arith.constant 127 : i32
    %49 = vector.broadcast %c127_i32_16 : i32 to vector<1x1xi32>
    %50 = arith.subi %49, %47 : vector<1x1xi32>
    %c23_i32_17 = arith.constant 23 : i32
    %51 = vector.broadcast %c23_i32_17 : i32 to vector<1x1xi32>
    %52 = arith.shli %50, %51 : vector<1x1xi32>
    %53 = tpu.bitcast %52 : vector<1x1xi32> -> vector<1x1xf32>
    %c127_i32_18 = arith.constant 127 : i32
    %54 = vector.broadcast %c127_i32_18 : i32 to vector<1x1xi32>
    %55 = arith.subi %54, %48 : vector<1x1xi32>
    %c23_i32_19 = arith.constant 23 : i32
    %56 = vector.broadcast %c23_i32_19 : i32 to vector<1x1xi32>
    %57 = arith.shli %55, %56 : vector<1x1xi32>
    %58 = tpu.bitcast %57 : vector<1x1xi32> -> vector<1x1xf32>
    %59 = arith.mulf %53, %58 : vector<1x1xf32>
    %60 = arith.mulf %26, %59 : vector<1x1xf32>
    %cst_20 = arith.constant 8.000000e-01 : f32
    %61 = vector.broadcast %cst_20 : f32 to vector<1x1xf32>
    %62 = arith.cmpf olt, %60, %61 : vector<1x1xf32>
    %cst_21 = arith.constant 1.000000e+01 : f32
    %cst_22 = arith.constant 1.000000e+00 : f32
    %63 = vector.broadcast %cst_21 : f32 to vector<1x1xf32>
    %64 = vector.broadcast %cst_22 : f32 to vector<1x1xf32>
    %65 = arith.select %62, %63, %64 : vector<1x1xi1>, vector<1x1xf32>
    %66 = arith.mulf %19, %59 : vector<1x1xf32>
    %67 = arith.mulf %66, %65 : vector<1x1xf32>
    %c0_23 = arith.constant 0 : index
    %c0_24 = arith.constant 0 : index
    %68 = vector.load %arg5[%c0_23, %c0_24] : memref<1x1xf32, #tpu.memory_space<vmem>>, vector<1x1xf32>
    tpu.vector_store %arg5[%c0_23, %c0_24], %67 {strides = array<i32>} : memref<1x1xf32, #tpu.memory_space<vmem>>, vector<1x1xf32>,
    %c0_25 = arith.constant 0 : index
    %c0_26 = arith.constant 0 : index
    %69 = vector.load %arg5[%c0_25, %c0_26] : memref<1x1xf32, #tpu.memory_space<vmem>>, vector<1x1xf32>
    %70 = vector.extract %69[0, 0] : f32 from vector<1x1xf32>
    %c0_27 = arith.constant 0 : index
    %c0_28 = arith.constant 0 : index
    %71 = memref.load %arg4[%c0_27, %c0_28] : memref<1x1xf32, #tpu.memory_space<smem>>
    memref.store %70, %arg4[%c0_27, %c0_28] : memref<1x1xf32, #tpu.memory_space<smem>>
    return
  }
}

</mosaic_0001>

<bundles_post_ra>
// kernel: fancy_mlp.1
= control target key start
LH: loop header
LB: loop body
LE: loop exit
PB: predicated region body
PF: predicated region fallthrough
CT: control target
= control target key end

     0   :  { %9 = vsyncpa [#allocation4], 0  ;;  %s635_s0 = inlined_call_operand.hbm [shape: f32[2,20], index: 0, kind: input, shape index: {}]   ;;  %s636_s1 = inlined_call_operand.hbm [shape: f32[20,20], index: 1, kind: input, shape index: {}]   ;;  %s637_s2 = inlined_call_operand.vmem [shape: f32[1,20], index: 2, kind: input, shape index: {}]   ;;  %s638_s3 = inlined_call_operand.hbm [shape: f32[20,20], index: 3, kind: input, shape index: {}]   ;;  %s639_s4 = inlined_call_operand.hbm [shape: f32[1,1], index: 4, kind: output, shape index: {}]  }
   0x1   :  { %10 = vsyncpa [#allocation7], 0 }
   0x2   :  { %11 = vsyncpa [#allocation5], 0  ;;  %s533_s15 = smov [#allocation6]   ;;  %s451_s19 = scalar_lea.hbm %s636_s1, 384 }
   0x3   :  { %s27_s16 = sshll.u32 %s533_s15, 4  ;;  %p452_p0 = scmp.ne.s32.totalorder %s636_s1, %s451_s19  ;;  %s28_s16 = int_to_ptr.vmem [resolvable:$true] %s27_s16 }
   0x4   :  { %p455_p1 = scmp.lt.u32.totalorder %s451_s19, %s636_s1 }
   0x6   :  { %p457_p2 = pnand %p455_p1, %p452_p0 }
   0x8   :  { %460 = shalt.err (!%p457_p2)
}
   0x9   :  { %s461_s24 = scalar_lea.vmem %s28_s16, 384  ;;  %p466_p4 = scmp.lt.s32.totalorder %s28_s16, %s28_s16 }
   0xa   :  { %p462_p3 = scmp.ne.s32.totalorder %s28_s16, %s461_s24  ;;  %p467_p5 = scmp.lt.s32.totalorder %s461_s24, %s461_s24 }
   0xc   :  { %p468_p6 = por %p467_p5, %p466_p4 }
   0xe   :  { %p469_p7 = pnand %p468_p6, %p462_p3 }
  0x10   :  { %472 = shalt.err (!%p469_p7)
}
  0x11   :  { %s534_s25 = smov 128   ;;  %s535_s26 = smov 8  }
  0x12   :  { %33 = dma.hbm_to_vmem [thread:$0]  %s636_s1, 384, %s28_s16, [#allocation7], %s534_s25, %s534_s25, %s535_s26  }
  0x13   :  { %s536_s29 = smov [#allocation3]   ;;  %s537_s5 = smov [#allocation8]  }
  0x14   :  { %s18_s30 = sshll.u32 %s536_s29, 4  ;;  %s41_s6 = sshll.u32 %s537_s5, 4  ;;  %s19_s30 = int_to_ptr.vmem [resolvable:$true] %s18_s30  ;;  %s42_s6 = int_to_ptr.vmem [resolvable:$true] %s41_s6 }
  0x15   :  { %s473_s9 = scalar_lea.hbm %s635_s0, 32 }
  0x16   :  { %p474_p8 = scmp.ne.s32.totalorder %s635_s0, %s473_s9  ;;  %p477_p9 = scmp.lt.u32.totalorder %s473_s9, %s635_s0 }
  0x18   :  { %p479_p10 = pnand %p477_p9, %p474_p8 }
  0x1a   :  { %482 = shalt.err (!%p479_p10)
}
  0x1b   :  { %s483_s1 = scalar_lea.vmem %s19_s30, 32  ;;  %p488_p12 = scmp.lt.s32.totalorder %s19_s30, %s19_s30 }
  0x1c   :  { %p484_p11 = scmp.ne.s32.totalorder %s19_s30, %s483_s1  ;;  %p489_p13 = scmp.lt.s32.totalorder %s483_s1, %s483_s1 }
  0x1e   :  { %p490_p0 = por %p489_p13, %p488_p12 }
  0x20   :  { %p491_p1 = pnand %p490_p0, %p484_p11 }
  0x22   :  { %494 = shalt.err (!%p491_p1)
}
  0x23   :  { %21 = dma.hbm_to_vmem [thread:$0]  %s635_s0, 32, %s19_s30, [#allocation4]  }
  0x24   :  { %s495_s18 = scalar_lea.hbm %s638_s3, 384 }
  0x25   :  { %p496_p2 = scmp.ne.s32.totalorder %s638_s3, %s495_s18  ;;  %p499_p3 = scmp.lt.u32.totalorder %s495_s18, %s638_s3 }
  0x27   :  { %p501_p4 = pnand %p499_p3, %p496_p2 }
  0x29   :  { %504 = shalt.err (!%p501_p4)
}
  0x2a   :  { %s505_s23 = scalar_lea.vmem %s42_s6, 384  ;;  %p510_p6 = scmp.lt.s32.totalorder %s42_s6, %s42_s6 }
  0x2b   :  { %p506_p5 = scmp.ne.s32.totalorder %s42_s6, %s505_s23  ;;  %p511_p7 = scmp.lt.s32.totalorder %s505_s23, %s505_s23 }
  0x2d   :  { %p512_p8 = por %p511_p7, %p510_p6 }
  0x2f   :  { %p513_p9 = pnand %p512_p8, %p506_p5 }
  0x31   :  { %516 = shalt.err (!%p513_p9)
}
  0x32   :  { %47 = dma.hbm_to_vmem [thread:$0]  %s638_s3, 384, %s42_s6, [#allocation7], %s534_s25, %s534_s25, %s535_s26  }
  0x33   :  { %527 = dma.done.wait [#allocation4], 32  }
  0x34   :  { %528 = vsyncadd [#allocation4], 4294967264 }
  0x35   :  { %529 = dma.done.wait [#allocation7], 768  }
  0x36   :  { %530 = vsyncadd [#allocation7], 4294966528  ;;  %v538_v0 = vmov 0.0|0.0   ;;  %vm539_vm0 = vmmov 0   ;;  %v540_v1 = vmov 0.0   ;;  %v58_v2 = vld [vmem:[#allocation6] sm:$0xff] }
  0x37   :  { %423 = vmatprep.subr.bf16.mxu0 %v538_v0  ;;  %402 = vmatprep.mubr.msk.f32.mxu0 %vm539_vm0, %v540_v1  ;;  %v59_v3 = vld [vmem:[#allocation6 + $0x8] sm:$0xff]  ;;  %v62_v5 = vld [vmem:[#allocation8] sm:$0xff]  ;;  %v63_v6 = vld [vmem:[#allocation8 + $0x8] sm:$0xff]  ;;  %vm75_vm1 = vcmask 1043456   ;;  %vm71_vm2 = vcmask 162816   ;;  %vm299_vm3 = vcmask 156672  }
  0x38   :  { %426 = vmatprep.subr.bf16.mxu1 %v538_v0  ;;  %411 = vmatprep.mubr.msk.f32.mxu1 %vm539_vm0, %v540_v1  ;;  %v424_v4 = vpack.c.bf16 %v59_v3, %v58_v2  ;;  %v427_v7 = vpack.c.bf16 %v63_v6, %v62_v5  ;;  %v60_v8 = vld [vmem:[#allocation6 + $0x10] sm:$0xf]  ;;  %v57_v9 = vld [vmem:[#allocation3] sm:$0x3]  ;;  %v64_v10 = vld [vmem:[#allocation8 + $0x10] sm:$0xf] }
  0x39   :  { %v376_v11 = vld [vmem:[%s637_s2] ss:$0 sm:$0xff]  ;;  %v541_v49 = vmov 0   ;;  %v542_v63 = vmov 1.0   ;;  %vm355_vm10 = vcmask 0   ;;  %s517_s30 = scalar_lea.hbm %s639_s4, 16 }
  0x3a   :  { %425 = vmatpush3.bf16.msra.mxu0 %v424_v4  ;;  %428 = vmatpush3.bf16.msra.mxu1 %v427_v7  ;;  %p518_p10 = scmp.ne.s32.totalorder %s639_s4, %s517_s30  ;;  %p521_p11 = scmp.lt.u32.totalorder %s517_s30, %s639_s4 }
  0x3b   :  { %400 = vmatprep.subr.mxu0 %v540_v1  ;;  %409 = vmatprep.subr.mxu1 %v540_v1 }
  0x3c   :  { %p523_p12 = pnand %p521_p11, %p518_p10 }
  0x3e   :  { %401 = vmatpush3.msk.msra.mxu0 %vm75_vm1, %v60_v8  ;;  %410 = vmatpush3.msk.msra.mxu1 %vm75_vm1, %v64_v10 }
  0x3f   :  { %403 = vmatmul.mubr.msk.f32.vlgmr.msra.gmra.mrb[0].mxu0 %vm71_vm2, %v57_v9  ;;  %429 = vmatprep.subr.bf16.mxu0 %v538_v0 }
  0x40   :  { %431 = vmatpush3.bf16.msra.mxu0 %v424_v4  ;;  %420 = vmatprep.mubr.msk.f32.mxu0 %vm539_vm0, %v540_v1 }
  0x41   :  { %418 = vmatprep.subr.mxu0 %v540_v1 }
  0x44   :  { %419 = vmatpush3.msk.msra.mxu0 %vm75_vm1, %v60_v8 }
 0x112   :  { %v145_v12 = vpop.f32.mrb[0].mxu0 }
 0x113   :  { %v146_v13 = vadd.f32 %v376_v11, %v145_v12  ;;  %v404_v14 = vpop.f32.mrb[1].mxu0 }
 0x115   :  { %412 = vmatmul.mubr.msk.f32.vlgmr.msra.gmra.mrb[0].mxu1 %vm71_vm2, %v146_v13 }
 0x1e8   :  { %v221_v15 = vpop.f32.mrb[0].mxu1 }
 0x1e9   :  { %v222_v16 = vadd.f32 1.0, %v221_v15  ;;  %v413_v17 = vpop.f32.mrb[1].mxu1 }
 0x1eb   :  { %v225_v18 = vmax.f32 %v222_v16, 0.0 }
 0x1ed   :  { %421 = vmatmul.mubr.msk.f32.vlgmr.msra.gmra.mrb[2].mxu0 %vm71_vm2, %v225_v18 }
 0x2c0   :  { %v295_v19 = vpop.f32.mrb[2].mxu0 }
 0x2c1   :  { %v296_v20 = vadd.f32 %v376_v11, %v295_v19  ;;  %v422_v21 = vpop.f32.mrb[3].mxu0 }
 0x2c3   :  { %v300_v22 = vsel %vm299_vm3, %v296_v20, 0.0  ;;  %v311_v23 = vmul.f32 %v296_v20, %v296_v20 }
 0x2c4   :  { %301 = vadd.xlane.f32.xlu0 %v300_v22 }
 0x2c5   :  { %v312_v24 = vsel %vm299_vm3, %v311_v23, 0.0 }
 0x2c8   :  { %313 = vadd.xlane.f32.xlu0 %v312_v24 }
 0x351   :  { %v302_v25 = vpop.xlane.xlu0 %301 }
 0x352   :  { %v303_v26 = vrot.slane %v302_v25, 4 }
 0x354   :  { %v304_v27 = vadd.f32 %v303_v26, %v302_v25 }
 0x355   :  { %v314_v28 = vpop.xlane.xlu0 %313 }
 0x356   :  { %v305_v29 = vrot.slane %v304_v27, 2  ;;  %v315_v30 = vrot.slane %v314_v28, 4 }
 0x358   :  { %v316_v31 = vadd.f32 %v315_v30, %v314_v28  ;;  %v306_v32 = vadd.f32 %v305_v29, %v304_v27 }
 0x35a   :  { %v317_v33 = vrot.slane %v316_v31, 2  ;;  %v307_v34 = vrot.slane %v306_v32, 1 }
 0x35c   :  { %v318_v35 = vadd.f32 %v317_v33, %v316_v31  ;;  %v308_v36 = vadd.f32 %v307_v34, %v306_v32 }
 0x35e   :  { %432 = vpush %v308_v36  ;;  %v319_v37 = vrot.slane %v318_v35, 1 }
 0x360   :  { %v320_v38 = vadd.f32 %v319_v37, %v318_v35 }
 0x362   :  { %434 = vpush %v320_v38 }
 0x38f   :  { %s620_s2 = spop %432 }
 0x390   :  { %v310_v61 = vstv %s620_s2 }
 0x393   :  { %s435_s26 = spop %434 }
 0x394   :  { %v322_v39 = vstv %s435_s26 }
 0x395   :  { %449 = vrsqrt.f32 %v322_v39  ;;  %vm325_vm4 = vcmp.eq.f32.partialorder %v322_v39, inf  ;;  %v328_v42 = vand.u32 2147483648, %v322_v39  ;;  %vm327_vm5 = vcmp.eq.f32.partialorder %v322_v39, 0.0 }
 0x39f   :  { %v450_v40 = vpop.eup %449 }
 0x3a0   :  { %v324_v41 = vmul.f32 %v450_v40, %v322_v39 }
 0x3a2   :  { %v326_v43 = vsel %vm325_vm4, %v322_v39, %v324_v41 }
 0x3a3   :  { %v329_v44 = vsel %vm327_vm5, %v328_v42, %v326_v43 }
 0x3a4   :  { %v331_v45 = vshra.s32 %v329_v44, 23  ;;  %v334_v46 = vand.u32 8388607, %v329_v44  ;;  %vm335_vm7 = vcmp.gt.f32.partialorder %v329_v44, 1.0 }
 0x3a6   :  { %v332_v47 = vand.u32 255, %v331_v45  ;;  %vm336_vm6 = vcmp.ne.s32.totalorder %v334_v46, 0 }
 0x3a7   :  { %v337_v50 = vsel %vm336_vm6, 1, %v541_v49 }
 0x3a8   :  { %v383_v48 = vadd.s32 4294967169, %v332_v47 }
 0x3aa   :  { %v338_v51 = vadd.s32 %v383_v48, %v337_v50 }
 0x3ac   :  { %v339_v52 = vsel %vm335_vm7, %v338_v51, 0 }
 0x3ad   :  { %vm340_vm8 = vcmp.lt.s32.totalorder %v339_v52, 64 }
 0x3ae   :  { %v341_v53 = vsel %vm340_vm8, %v339_v52, 64 }
 0x3af   :  { %v342_v54 = vsub.s32 %v339_v52, %v341_v53  ;;  %v343_v55 = vsub.s32 127, %v341_v53 }
 0x3b1   :  { %v346_v56 = vsub.s32 127, %v342_v54  ;;  %v344_v57 = vshll.u32 %v343_v55, 23 }
 0x3b3   :  { %v347_v58 = vshll.u32 %v346_v56, 23 }
 0x3b5   :  { %v349_v59 = vmul.f32 %v347_v58, %v344_v57 }
 0x3b7   :  { %v350_v60 = vmul.f32 %v349_v59, %v329_v44  ;;  %v353_v62 = vmul.f32 %v349_v59, %v310_v61 }
 0x3b9   :  { %vm351_vm9 = vcmp.lt.f32.partialorder %v350_v60, 0.8 }
 0x3ba   :  { %v352_v0 = vsel %vm351_vm9, 10.0, %v542_v63 }
 0x3bb   :  { %v354_v1 = vmul.f32 %v353_v62, %v352_v0 }
 0x3bd   :  { %356 = vst.msk [vmem:[#allocation2] sm:$0x1] %vm355_vm10, %v354_v1 }
 0x3c4   :  { %v357_v2 = vld [vmem:[#allocation2] sm:$0x1] }
 0x3c5   :  { %436 = vpush %v357_v2 }
 0x3f6   :  { %s437_s27 = spop %436 }
 0x3f7   :  { %360 = sst [smem:[#allocation9]] %s437_s27 }
 0x3f8   :  { %526 = shalt.err (!%p523_p12)
}
 0x3f9   :  { %s543_s9 = smov [#allocation9]  }
 0x3fa   :  { %368 = dma.smem_to_hbm %s543_s9, 16, %s639_s4, [#allocation5]  }
 0x3fb   :  { %531 = dma.done.wait [#allocation5], 16  }
 0x3fc   :  { %532 = vsyncadd [#allocation5], 4294967280 }
 0x3fd   :  { %372 = sfence }
 0x3fe   :  { %373 = vsyncpa [#allocation4], 1 }
 0x3ff   :  { %374 = vsyncpa [#allocation7], 1 }
 0x400   :  { %375 = vsyncpa [#allocation5], 1 }

</bundles_post_ra>
